<compile_context>
chip_gen: v7x
topology: tpu7x:2x2x1
jax: 0.10.0
libtpu: 0.0.40
codegen_flags: <defaults>
</compile_context>

<pallas_src>
import jax
import jax.numpy as jnp
import numpy as np
from jax import lax
from jax.experimental import pallas as pl
from jax.experimental.pallas import tpu as pltpu

LANES = 128
HIDDEN = 16
CHUNK = 64     # sublane-rows per in-kernel chunk: keeps the 16-step chain vreg-resident
TS_MAX = 2048  # max sublane-rows per grid tile: 3 MiB f32 input block, ~8 MiB double-buffered


def _make_kernel(compute_dtype):
    cdt = np.dtype(compute_dtype)
    f32 = np.dtype(jnp.float32)

    def kernel(x_ref, w1_ref, b1_ref, w2_ref, b2_ref, o_ref):
        # x_ref : (1, 3, ts, 128) VMEM  (channel-planar pixel slab)
        # w1_ref: (3,16), b1_ref: (16,), w2_ref: (16,), b2_ref: (1,)  -- f32 in SMEM
        # o_ref : (1, 1, ts, 128) f32 VMEM
        ts = x_ref.shape[2]

        # Hoist all 81 weight/bias reads once per grid step (not per chunk).
        if cdt == f32:
            prep = lambda s: s                      # raw SMEM scalar (proven f32 path)
        else:
            # Avoid scalar-bf16 arithmetic: splat to a (1,128) f32 row, then vector-cast.
            prep = lambda s: jnp.full((1, LANES), s, jnp.float32).astype(cdt)
        w1v = [[prep(w1_ref[c, j]) for j in range(HIDDEN)] for c in range(3)]
        b1v = [prep(b1_ref[j]) for j in range(HIDDEN)]
        w2v = [prep(w2_ref[j]) for j in range(HIDDEN)]
        b2v = prep(b2_ref[0])

        def compute(r0, nrows):
            sl = pl.ds(r0, nrows)
            x0 = x_ref[0, 0, sl, :].astype(cdt)
            x1 = x_ref[0, 1, sl, :].astype(cdt)
            x2 = x_ref[0, 2, sl, :].astype(cdt)
            acc = jnp.zeros(x0.shape, cdt)
            for j in range(HIDDEN):                 # unrolled VPU broadcast-FMA chain (no MXU)
                h = x0 * w1v[0][j] + x1 * w1v[1][j] + x2 * w1v[2][j] + b1v[j]
                h = jnp.maximum(h, 0.0)             # ReLU
                acc = acc + h * w2v[j]
            # Tanh in f32 on the EUP (output is f32; avoids bf16-EUP portability issues).
            o_ref[0, 0, sl, :] = jnp.tanh((acc + b2v).astype(jnp.float32)).astype(o_ref.dtype)

        n_full = ts // CHUNK
        tail = ts - n_full * CHUNK
        if n_full > 0:
            def body(i, carry):
                compute(pl.multiple_of(i * CHUNK, CHUNK), CHUNK)
                return carry
            lax.fori_loop(0, n_full, body, 0)       # bounds live ranges -> no vreg spills
        if tail > 0:
            compute(n_full * CHUNK, tail)

    return kernel


def _pick_tile_rows(rows):
    """Sublane-rows per grid tile: the full extent if it fits, otherwise a balanced tile
    size in (TS_MAX/2, TS_MAX] that is a multiple of CHUNK.  Ragged boundary tiles are
    handled by Pallas partial blocks, so no padding is ever added for tiling."""
    if rows <= TS_MAX:
        return rows
    n_tiles = pl.cdiv(rows, TS_MAX)
    ts = pl.cdiv(rows, n_tiles)
    return pl.cdiv(ts, CHUNK) * CHUNK


def guide_nn_pallas(x_nchw, w1, b1, w2, b2, *, compute_dtype=jnp.float32):
    """GuideNN forward: Tanh(Conv1x1_{16->1}(ReLU(Conv1x1_{3->16}(x)))).

    x_nchw: (N, 3, H, W).  w1: (3,16) (= torch conv1.weight[:,:,0,0].T), b1: (16,),
    w2: (16,) (= torch conv2.weight[0,:,0,0]), b2: (1,).  Returns (N, 1, H, W) f32.
    compute_dtype: jnp.float32 (default; use on v5e) or jnp.bfloat16 (~2x on v6e/v7x,
    ~1e-2 relative error)."""
    N, C, H, W = x_nchw.shape
    assert C == 3
    P = H * W
    rows = pl.cdiv(P, LANES)
    ts = _pick_tile_rows(rows)
    n_row_tiles = pl.cdiv(rows, ts)

    w1 = w1.astype(jnp.float32)
    b1 = b1.astype(jnp.float32)
    w2 = w2.astype(jnp.float32)
    b2 = b2.astype(jnp.float32)

    x = x_nchw.reshape(N, C, P)                    # contiguous reshape, no transpose
    if rows * LANES != P:
        # Rare: H*W not a multiple of 128 -> minimal (<128 px) pad to fold onto lanes.
        x = jnp.pad(x, ((0, 0), (0, 0), (0, rows * LANES - P)))
    x = x.reshape(N, C, rows, LANES)

    out = pl.pallas_call(
        _make_kernel(compute_dtype),
        out_shape=jax.ShapeDtypeStruct((N, 1, rows, LANES), jnp.float32),
        grid_spec=pltpu.PrefetchScalarGridSpec(
            num_scalar_prefetch=0,
            grid=(n_row_tiles, N),                 # large axis first: v7x TCs split row tiles
            in_specs=[
                pl.BlockSpec((1, C, ts, LANES), lambda t, n: (n, 0, t, 0)),   # x slab (VMEM)
                pl.BlockSpec(memory_space=pltpu.MemorySpace.SMEM),            # w1 (3,16)
                pl.BlockSpec(memory_space=pltpu.MemorySpace.SMEM),            # b1 (16,)
                pl.BlockSpec(memory_space=pltpu.MemorySpace.SMEM),            # w2 (16,)
                pl.BlockSpec(memory_space=pltpu.MemorySpace.SMEM),            # b2 (1,)
            ],
            out_specs=pl.BlockSpec((1, 1, ts, LANES), lambda t, n: (n, 0, t, 0)),
        ),
        compiler_params=pltpu.CompilerParams(
            dimension_semantics=("parallel", "parallel"),
        ),
    )(x, w1, b1, w2, b2)

    out = out.reshape(N, 1, rows * LANES)
    if rows * LANES != P:
        out = out[:, :, :P]
    return out.reshape(N, 1, H, W)


def _init_params(key):
    """Deterministic synthetic params matching GuideNN's 1x1 convs:
    conv1: Conv2d(3,16,k=1) -> weight stored as (Cin=3, Cout=16), bias (16,)
    conv2: Conv2d(16,1,k=1) -> weight stored as (Cin=16,), bias (1,)."""
    k1, k2, k3, k4 = jax.random.split(key, 4)
    w1 = jax.random.normal(k1, (3, 16), jnp.float32) * 0.5
    b1 = jax.random.normal(k2, (16,), jnp.float32) * 0.1
    w2 = jax.random.normal(k3, (16,), jnp.float32) * 0.5
    b2 = jax.random.normal(k4, (1,), jnp.float32) * 0.1
    return w1, b1, w2, b2


def _reference(x_nchw, w1, b1, w2, b2):
    # Pure-JAX reference of the PyTorch forward (1x1 convs as channel matmuls).
    x = jnp.transpose(x_nchw, (0, 2, 3, 1))            # NHWC
    h = jnp.maximum(x @ w1 + b1, 0.0)                  # (N,H,W,16)
    y = jnp.tanh(h @ w2[:, None] + b2)                 # (N,H,W,1)
    return jnp.transpose(y, (0, 3, 1, 2))              # NCHW


if __name__ == "__main__":
    key = jax.random.PRNGKey(0)
    kx, kp = jax.random.split(key)
    w1, b1, w2, b2 = _init_params(kp)

    # Primary small example (N=2, C=3, 16x16).
    N, C, H, W = 2, 3, 16, 16
    x = jax.random.normal(kx, (N, C, H, W), jnp.float32)
    out = jax.block_until_ready(guide_nn_pallas(x, w1, b1, w2, b2))
    ref = _reference(x, w1, b1, w2, b2)
    assert out.shape == (N, 1, H, W)
    assert jnp.allclose(out, ref, atol=1e-5, rtol=1e-5)

    # bf16 compute path (intended for v6e/v7x; correct everywhere, looser tolerance).
    out_bf16 = jax.block_until_ready(
        guide_nn_pallas(x, w1, b1, w2, b2, compute_dtype=jnp.bfloat16))
    assert jnp.max(jnp.abs(out_bf16 - ref)) < 1e-1
    assert jnp.mean(jnp.abs(out_bf16 - ref)) < 2e-2

    # In-kernel chunk loop + ragged chunk tail (rows=300: 4 full 64-row chunks + 44 tail).
    x2 = jax.random.normal(jax.random.PRNGKey(1), (1, 3, 200, 192), jnp.float32)
    o2 = jax.block_until_ready(guide_nn_pallas(x2, w1, b1, w2, b2))
    assert jnp.allclose(o2, _reference(x2, w1, b1, w2, b2), atol=1e-4, rtol=1e-4)

    # Multi-tile grid with a partial boundary tile (rows=2080 > TS_MAX -> 2 tiles of 1088).
    x3 = jax.random.normal(jax.random.PRNGKey(2), (1, 3, 520, 512), jnp.float32)
    o3 = jax.block_until_ready(guide_nn_pallas(x3, w1, b1, w2, b2))
    assert jnp.allclose(o3, _reference(x3, w1, b1, w2, b2), atol=1e-4, rtol=1e-4)

    # Ragged H*W (not a multiple of 128): minimal pad + output slice path.
    x4 = jax.random.normal(jax.random.PRNGKey(3), (2, 3, 17, 19), jnp.float32)
    o4 = jax.block_until_ready(guide_nn_pallas(x4, w1, b1, w2, b2))
    assert jnp.allclose(o4, _reference(x4, w1, b1, w2, b2), atol=1e-4, rtol=1e-4)

    print("KERNEL_OK")
</pallas_src>

<mosaic_0001>
module attributes {stable_mosaic.version = 11 : i64} {
  func.func @kernel(%arg0: i32, %arg1: i32, %arg2: memref<1x3x2x128xf32, #tpu.memory_space<vmem>>, %arg3: memref<3x16xf32, #tpu.memory_space<smem>>, %arg4: memref<16xf32, #tpu.memory_space<smem>>, %arg5: memref<16xf32, #tpu.memory_space<smem>>, %arg6: memref<1xf32, #tpu.memory_space<smem>>, %arg7: memref<1x1x2x128xf32, #tpu.memory_space<vmem>>) attributes {dimension_semantics = [#tpu.dimension_semantics<parallel>, #tpu.dimension_semantics<parallel>], iteration_bounds = array<i64: 1, 2>, scalar_prefetch = 0 : i64, scratch_operands = 0 : i64, tpu.core_type = #tpu.core_type<tc>, window_params = [{transform_indices = @transform_0, window_bounds = array<i64: 1, 3, 2, 128>}, {transform_indices = @transform_1, window_bounds = array<i64: 3, 16>}, {transform_indices = @transform_2, window_bounds = array<i64: 16>}, {transform_indices = @transform_3, window_bounds = array<i64: 16>}, {transform_indices = @transform_4, window_bounds = array<i64: 1>}, {transform_indices = @transform_5, window_bounds = array<i64: 1, 1, 2, 128>}]} {
    %c0 = arith.constant 0 : index
    %c0_0 = arith.constant 0 : index
    %0 = memref.load %arg3[%c0, %c0_0] : memref<3x16xf32, #tpu.memory_space<smem>>
    %c0_1 = arith.constant 0 : index
    %c1 = arith.constant 1 : index
    %1 = memref.load %arg3[%c0_1, %c1] : memref<3x16xf32, #tpu.memory_space<smem>>
    %c0_2 = arith.constant 0 : index
    %c2 = arith.constant 2 : index
    %2 = memref.load %arg3[%c0_2, %c2] : memref<3x16xf32, #tpu.memory_space<smem>>
    %c0_3 = arith.constant 0 : index
    %c3 = arith.constant 3 : index
    %3 = memref.load %arg3[%c0_3, %c3] : memref<3x16xf32, #tpu.memory_space<smem>>
    %c0_4 = arith.constant 0 : index
    %c4 = arith.constant 4 : index
    %4 = memref.load %arg3[%c0_4, %c4] : memref<3x16xf32, #tpu.memory_space<smem>>
    %c0_5 = arith.constant 0 : index
    %c5 = arith.constant 5 : index
    %5 = memref.load %arg3[%c0_5, %c5] : memref<3x16xf32, #tpu.memory_space<smem>>
    %c0_6 = arith.constant 0 : index
    %c6 = arith.constant 6 : index
    %6 = memref.load %arg3[%c0_6, %c6] : memref<3x16xf32, #tpu.memory_space<smem>>
    %c0_7 = arith.constant 0 : index
    %c7 = arith.constant 7 : index
    %7 = memref.load %arg3[%c0_7, %c7] : memref<3x16xf32, #tpu.memory_space<smem>>
    %c0_8 = arith.constant 0 : index
    %c8 = arith.constant 8 : index
    %8 = memref.load %arg3[%c0_8, %c8] : memref<3x16xf32, #tpu.memory_space<smem>>
    %c0_9 = arith.constant 0 : index
    %c9 = arith.constant 9 : index
    %9 = memref.load %arg3[%c0_9, %c9] : memref<3x16xf32, #tpu.memory_space<smem>>
    %c0_10 = arith.constant 0 : index
    %c10 = arith.constant 10 : index
    %10 = memref.load %arg3[%c0_10, %c10] : memref<3x16xf32, #tpu.memory_space<smem>>
    %c0_11 = arith.constant 0 : index
    %c11 = arith.constant 11 : index
    %11 = memref.load %arg3[%c0_11, %c11] : memref<3x16xf32, #tpu.memory_space<smem>>
    %c0_12 = arith.constant 0 : index
    %c12 = arith.constant 12 : index
    %12 = memref.load %arg3[%c0_12, %c12] : memref<3x16xf32, #tpu.memory_space<smem>>
    %c0_13 = arith.constant 0 : index
    %c13 = arith.constant 13 : index
    %13 = memref.load %arg3[%c0_13, %c13] : memref<3x16xf32, #tpu.memory_space<smem>>
    %c0_14 = arith.constant 0 : index
    %c14 = arith.constant 14 : index
    %14 = memref.load %arg3[%c0_14, %c14] : memref<3x16xf32, #tpu.memory_space<smem>>
    %c0_15 = arith.constant 0 : index
    %c15 = arith.constant 15 : index
    %15 = memref.load %arg3[%c0_15, %c15] : memref<3x16xf32, #tpu.memory_space<smem>>
    %c1_16 = arith.constant 1 : index
    %c0_17 = arith.constant 0 : index
    %16 = memref.load %arg3[%c1_16, %c0_17] : memref<3x16xf32, #tpu.memory_space<smem>>
    %c1_18 = arith.constant 1 : index
    %c1_19 = arith.constant 1 : index
    %17 = memref.load %arg3[%c1_18, %c1_19] : memref<3x16xf32, #tpu.memory_space<smem>>
    %c1_20 = arith.constant 1 : index
    %c2_21 = arith.constant 2 : index
    %18 = memref.load %arg3[%c1_20, %c2_21] : memref<3x16xf32, #tpu.memory_space<smem>>
    %c1_22 = arith.constant 1 : index
    %c3_23 = arith.constant 3 : index
    %19 = memref.load %arg3[%c1_22, %c3_23] : memref<3x16xf32, #tpu.memory_space<smem>>
    %c1_24 = arith.constant 1 : index
    %c4_25 = arith.constant 4 : index
    %20 = memref.load %arg3[%c1_24, %c4_25] : memref<3x16xf32, #tpu.memory_space<smem>>
    %c1_26 = arith.constant 1 : index
    %c5_27 = arith.constant 5 : index
    %21 = memref.load %arg3[%c1_26, %c5_27] : memref<3x16xf32, #tpu.memory_space<smem>>
    %c1_28 = arith.constant 1 : index
    %c6_29 = arith.constant 6 : index
    %22 = memref.load %arg3[%c1_28, %c6_29] : memref<3x16xf32, #tpu.memory_space<smem>>
    %c1_30 = arith.constant 1 : index
    %c7_31 = arith.constant 7 : index
    %23 = memref.load %arg3[%c1_30, %c7_31] : memref<3x16xf32, #tpu.memory_space<smem>>
    %c1_32 = arith.constant 1 : index
    %c8_33 = arith.constant 8 : index
    %24 = memref.load %arg3[%c1_32, %c8_33] : memref<3x16xf32, #tpu.memory_space<smem>>
    %c1_34 = arith.constant 1 : index
    %c9_35 = arith.constant 9 : index
    %25 = memref.load %arg3[%c1_34, %c9_35] : memref<3x16xf32, #tpu.memory_space<smem>>
    %c1_36 = arith.constant 1 : index
    %c10_37 = arith.constant 10 : index
    %26 = memref.load %arg3[%c1_36, %c10_37] : memref<3x16xf32, #tpu.memory_space<smem>>
    %c1_38 = arith.constant 1 : index
    %c11_39 = arith.constant 11 : index
    %27 = memref.load %arg3[%c1_38, %c11_39] : memref<3x16xf32, #tpu.memory_space<smem>>
    %c1_40 = arith.constant 1 : index
    %c12_41 = arith.constant 12 : index
    %28 = memref.load %arg3[%c1_40, %c12_41] : memref<3x16xf32, #tpu.memory_space<smem>>
    %c1_42 = arith.constant 1 : index
    %c13_43 = arith.constant 13 : index
    %29 = memref.load %arg3[%c1_42, %c13_43] : memref<3x16xf32, #tpu.memory_space<smem>>
    %c1_44 = arith.constant 1 : index
    %c14_45 = arith.constant 14 : index
    %30 = memref.load %arg3[%c1_44, %c14_45] : memref<3x16xf32, #tpu.memory_space<smem>>
    %c1_46 = arith.constant 1 : index
    %c15_47 = arith.constant 15 : index
    %31 = memref.load %arg3[%c1_46, %c15_47] : memref<3x16xf32, #tpu.memory_space<smem>>
    %c2_48 = arith.constant 2 : index
    %c0_49 = arith.constant 0 : index
    %32 = memref.load %arg3[%c2_48, %c0_49] : memref<3x16xf32, #tpu.memory_space<smem>>
    %c2_50 = arith.constant 2 : index
    %c1_51 = arith.constant 1 : index
    %33 = memref.load %arg3[%c2_50, %c1_51] : memref<3x16xf32, #tpu.memory_space<smem>>
    %c2_52 = arith.constant 2 : index
    %c2_53 = arith.constant 2 : index
    %34 = memref.load %arg3[%c2_52, %c2_53] : memref<3x16xf32, #tpu.memory_space<smem>>
    %c2_54 = arith.constant 2 : index
    %c3_55 = arith.constant 3 : index
    %35 = memref.load %arg3[%c2_54, %c3_55] : memref<3x16xf32, #tpu.memory_space<smem>>
    %c2_56 = arith.constant 2 : index
    %c4_57 = arith.constant 4 : index
    %36 = memref.load %arg3[%c2_56, %c4_57] : memref<3x16xf32, #tpu.memory_space<smem>>
    %c2_58 = arith.constant 2 : index
    %c5_59 = arith.constant 5 : index
    %37 = memref.load %arg3[%c2_58, %c5_59] : memref<3x16xf32, #tpu.memory_space<smem>>
    %c2_60 = arith.constant 2 : index
    %c6_61 = arith.constant 6 : index
    %38 = memref.load %arg3[%c2_60, %c6_61] : memref<3x16xf32, #tpu.memory_space<smem>>
    %c2_62 = arith.constant 2 : index
    %c7_63 = arith.constant 7 : index
    %39 = memref.load %arg3[%c2_62, %c7_63] : memref<3x16xf32, #tpu.memory_space<smem>>
    %c2_64 = arith.constant 2 : index
    %c8_65 = arith.constant 8 : index
    %40 = memref.load %arg3[%c2_64, %c8_65] : memref<3x16xf32, #tpu.memory_space<smem>>
    %c2_66 = arith.constant 2 : index
    %c9_67 = arith.constant 9 : index
    %41 = memref.load %arg3[%c2_66, %c9_67] : memref<3x16xf32, #tpu.memory_space<smem>>
    %c2_68 = arith.constant 2 : index
    %c10_69 = arith.constant 10 : index
    %42 = memref.load %arg3[%c2_68, %c10_69] : memref<3x16xf32, #tpu.memory_space<smem>>
    %c2_70 = arith.constant 2 : index
    %c11_71 = arith.constant 11 : index
    %43 = memref.load %arg3[%c2_70, %c11_71] : memref<3x16xf32, #tpu.memory_space<smem>>
    %c2_72 = arith.constant 2 : index
    %c12_73 = arith.constant 12 : index
    %44 = memref.load %arg3[%c2_72, %c12_73] : memref<3x16xf32, #tpu.memory_space<smem>>
    %c2_74 = arith.constant 2 : index
    %c13_75 = arith.constant 13 : index
    %45 = memref.load %arg3[%c2_74, %c13_75] : memref<3x16xf32, #tpu.memory_space<smem>>
    %c2_76 = arith.constant 2 : index
    %c14_77 = arith.constant 14 : index
    %46 = memref.load %arg3[%c2_76, %c14_77] : memref<3x16xf32, #tpu.memory_space<smem>>
    %c2_78 = arith.constant 2 : index
    %c15_79 = arith.constant 15 : index
    %47 = memref.load %arg3[%c2_78, %c15_79] : memref<3x16xf32, #tpu.memory_space<smem>>
    %c0_80 = arith.constant 0 : index
    %48 = memref.load %arg4[%c0_80] : memref<16xf32, #tpu.memory_space<smem>>
    %c1_81 = arith.constant 1 : index
    %49 = memref.load %arg4[%c1_81] : memref<16xf32, #tpu.memory_space<smem>>
    %c2_82 = arith.constant 2 : index
    %50 = memref.load %arg4[%c2_82] : memref<16xf32, #tpu.memory_space<smem>>
    %c3_83 = arith.constant 3 : index
    %51 = memref.load %arg4[%c3_83] : memref<16xf32, #tpu.memory_space<smem>>
    %c4_84 = arith.constant 4 : index
    %52 = memref.load %arg4[%c4_84] : memref<16xf32, #tpu.memory_space<smem>>
    %c5_85 = arith.constant 5 : index
    %53 = memref.load %arg4[%c5_85] : memref<16xf32, #tpu.memory_space<smem>>
    %c6_86 = arith.constant 6 : index
    %54 = memref.load %arg4[%c6_86] : memref<16xf32, #tpu.memory_space<smem>>
    %c7_87 = arith.constant 7 : index
    %55 = memref.load %arg4[%c7_87] : memref<16xf32, #tpu.memory_space<smem>>
    %c8_88 = arith.constant 8 : index
    %56 = memref.load %arg4[%c8_88] : memref<16xf32, #tpu.memory_space<smem>>
    %c9_89 = arith.constant 9 : index
    %57 = memref.load %arg4[%c9_89] : memref<16xf32, #tpu.memory_space<smem>>
    %c10_90 = arith.constant 10 : index
    %58 = memref.load %arg4[%c10_90] : memref<16xf32, #tpu.memory_space<smem>>
    %c11_91 = arith.constant 11 : index
    %59 = memref.load %arg4[%c11_91] : memref<16xf32, #tpu.memory_space<smem>>
    %c12_92 = arith.constant 12 : index
    %60 = memref.load %arg4[%c12_92] : memref<16xf32, #tpu.memory_space<smem>>
    %c13_93 = arith.constant 13 : index
    %61 = memref.load %arg4[%c13_93] : memref<16xf32, #tpu.memory_space<smem>>
    %c14_94 = arith.constant 14 : index
    %62 = memref.load %arg4[%c14_94] : memref<16xf32, #tpu.memory_space<smem>>
    %c15_95 = arith.constant 15 : index
    %63 = memref.load %arg4[%c15_95] : memref<16xf32, #tpu.memory_space<smem>>
    %c0_96 = arith.constant 0 : index
    %64 = memref.load %arg5[%c0_96] : memref<16xf32, #tpu.memory_space<smem>>
    %c1_97 = arith.constant 1 : index
    %65 = memref.load %arg5[%c1_97] : memref<16xf32, #tpu.memory_space<smem>>
    %c2_98 = arith.constant 2 : index
    %66 = memref.load %arg5[%c2_98] : memref<16xf32, #tpu.memory_space<smem>>
    %c3_99 = arith.constant 3 : index
    %67 = memref.load %arg5[%c3_99] : memref<16xf32, #tpu.memory_space<smem>>
    %c4_100 = arith.constant 4 : index
    %68 = memref.load %arg5[%c4_100] : memref<16xf32, #tpu.memory_space<smem>>
    %c5_101 = arith.constant 5 : index
    %69 = memref.load %arg5[%c5_101] : memref<16xf32, #tpu.memory_space<smem>>
    %c6_102 = arith.constant 6 : index
    %70 = memref.load %arg5[%c6_102] : memref<16xf32, #tpu.memory_space<smem>>
    %c7_103 = arith.constant 7 : index
    %71 = memref.load %arg5[%c7_103] : memref<16xf32, #tpu.memory_space<smem>>
    %c8_104 = arith.constant 8 : index
    %72 = memref.load %arg5[%c8_104] : memref<16xf32, #tpu.memory_space<smem>>
    %c9_105 = arith.constant 9 : index
    %73 = memref.load %arg5[%c9_105] : memref<16xf32, #tpu.memory_space<smem>>
    %c10_106 = arith.constant 10 : index
    %74 = memref.load %arg5[%c10_106] : memref<16xf32, #tpu.memory_space<smem>>
    %c11_107 = arith.constant 11 : index
    %75 = memref.load %arg5[%c11_107] : memref<16xf32, #tpu.memory_space<smem>>
    %c12_108 = arith.constant 12 : index
    %76 = memref.load %arg5[%c12_108] : memref<16xf32, #tpu.memory_space<smem>>
    %c13_109 = arith.constant 13 : index
    %77 = memref.load %arg5[%c13_109] : memref<16xf32, #tpu.memory_space<smem>>
    %c14_110 = arith.constant 14 : index
    %78 = memref.load %arg5[%c14_110] : memref<16xf32, #tpu.memory_space<smem>>
    %c15_111 = arith.constant 15 : index
    %79 = memref.load %arg5[%c15_111] : memref<16xf32, #tpu.memory_space<smem>>
    %c0_112 = arith.constant 0 : index
    %80 = memref.load %arg6[%c0_112] : memref<1xf32, #tpu.memory_space<smem>>
    %c0_113 = arith.constant 0 : index
    %c0_114 = arith.constant 0 : index
    %c0_115 = arith.constant 0 : index
    %c0_116 = arith.constant 0 : index
    %81 = vector.load %arg2[%c0_113, %c0_114, %c0_115, %c0_116] : memref<1x3x2x128xf32, #tpu.memory_space<vmem>>, vector<1x1x2x128xf32>
    %82 = vector.shape_cast %81 : vector<1x1x2x128xf32> to vector<2x128xf32>
    %c0_117 = arith.constant 0 : index
    %c1_118 = arith.constant 1 : index
    %c0_119 = arith.constant 0 : index
    %c0_120 = arith.constant 0 : index
    %83 = vector.load %arg2[%c0_117, %c1_118, %c0_119, %c0_120] : memref<1x3x2x128xf32, #tpu.memory_space<vmem>>, vector<1x1x2x128xf32>
    %84 = vector.shape_cast %83 : vector<1x1x2x128xf32> to vector<2x128xf32>
    %c0_121 = arith.constant 0 : index
    %c2_122 = arith.constant 2 : index
    %c0_123 = arith.constant 0 : index
    %c0_124 = arith.constant 0 : index
    %85 = vector.load %arg2[%c0_121, %c2_122, %c0_123, %c0_124] : memref<1x3x2x128xf32, #tpu.memory_space<vmem>>, vector<1x1x2x128xf32>
    %86 = vector.shape_cast %85 : vector<1x1x2x128xf32> to vector<2x128xf32>
    %cst = arith.constant 0.000000e+00 : f32
    %87 = vector.broadcast %cst : f32 to vector<2x128xf32>
    %88 = vector.broadcast %0 : f32 to vector<2x128xf32>
    %89 = arith.mulf %82, %88 : vector<2x128xf32>
    %90 = vector.broadcast %16 : f32 to vector<2x128xf32>
    %91 = arith.mulf %84, %90 : vector<2x128xf32>
    %92 = arith.addf %89, %91 : vector<2x128xf32>
    %93 = vector.broadcast %32 : f32 to vector<2x128xf32>
    %94 = arith.mulf %86, %93 : vector<2x128xf32>
    %95 = arith.addf %92, %94 : vector<2x128xf32>
    %96 = vector.broadcast %48 : f32 to vector<2x128xf32>
    %97 = arith.addf %95, %96 : vector<2x128xf32>
    %cst_125 = arith.constant 0.000000e+00 : f32
    %98 = vector.broadcast %cst_125 : f32 to vector<2x128xf32>
    %99 = arith.maximumf %97, %98 : vector<2x128xf32>
    %100 = vector.broadcast %64 : f32 to vector<2x128xf32>
    %101 = arith.mulf %99, %100 : vector<2x128xf32>
    %102 = arith.addf %87, %101 : vector<2x128xf32>
    %103 = vector.broadcast %1 : f32 to vector<2x128xf32>
    %104 = arith.mulf %82, %103 : vector<2x128xf32>
    %105 = vector.broadcast %17 : f32 to vector<2x128xf32>
    %106 = arith.mulf %84, %105 : vector<2x128xf32>
    %107 = arith.addf %104, %106 : vector<2x128xf32>
    %108 = vector.broadcast %33 : f32 to vector<2x128xf32>
    %109 = arith.mulf %86, %108 : vector<2x128xf32>
    %110 = arith.addf %107, %109 : vector<2x128xf32>
    %111 = vector.broadcast %49 : f32 to vector<2x128xf32>
    %112 = arith.addf %110, %111 : vector<2x128xf32>
    %cst_126 = arith.constant 0.000000e+00 : f32
    %113 = vector.broadcast %cst_126 : f32 to vector<2x128xf32>
    %114 = arith.maximumf %112, %113 : vector<2x128xf32>
    %115 = vector.broadcast %65 : f32 to vector<2x128xf32>
    %116 = arith.mulf %114, %115 : vector<2x128xf32>
    %117 = arith.addf %102, %116 : vector<2x128xf32>
    %118 = vector.broadcast %2 : f32 to vector<2x128xf32>
    %119 = arith.mulf %82, %118 : vector<2x128xf32>
    %120 = vector.broadcast %18 : f32 to vector<2x128xf32>
    %121 = arith.mulf %84, %120 : vector<2x128xf32>
    %122 = arith.addf %119, %121 : vector<2x128xf32>
    %123 = vector.broadcast %34 : f32 to vector<2x128xf32>
    %124 = arith.mulf %86, %123 : vector<2x128xf32>
    %125 = arith.addf %122, %124 : vector<2x128xf32>
    %126 = vector.broadcast %50 : f32 to vector<2x128xf32>
    %127 = arith.addf %125, %126 : vector<2x128xf32>
    %cst_127 = arith.constant 0.000000e+00 : f32
    %128 = vector.broadcast %cst_127 : f32 to vector<2x128xf32>
    %129 = arith.maximumf %127, %128 : vector<2x128xf32>
    %130 = vector.broadcast %66 : f32 to vector<2x128xf32>
    %131 = arith.mulf %129, %130 : vector<2x128xf32>
    %132 = arith.addf %117, %131 : vector<2x128xf32>
    %133 = vector.broadcast %3 : f32 to vector<2x128xf32>
    %134 = arith.mulf %82, %133 : vector<2x128xf32>
    %135 = vector.broadcast %19 : f32 to vector<2x128xf32>
    %136 = arith.mulf %84, %135 : vector<2x128xf32>
    %137 = arith.addf %134, %136 : vector<2x128xf32>
    %138 = vector.broadcast %35 : f32 to vector<2x128xf32>
    %139 = arith.mulf %86, %138 : vector<2x128xf32>
    %140 = arith.addf %137, %139 : vector<2x128xf32>
    %141 = vector.broadcast %51 : f32 to vector<2x128xf32>
    %142 = arith.addf %140, %141 : vector<2x128xf32>
    %cst_128 = arith.constant 0.000000e+00 : f32
    %143 = vector.broadcast %cst_128 : f32 to vector<2x128xf32>
    %144 = arith.maximumf %142, %143 : vector<2x128xf32>
    %145 = vector.broadcast %67 : f32 to vector<2x128xf32>
    %146 = arith.mulf %144, %145 : vector<2x128xf32>
    %147 = arith.addf %132, %146 : vector<2x128xf32>
    %148 = vector.broadcast %4 : f32 to vector<2x128xf32>
    %149 = arith.mulf %82, %148 : vector<2x128xf32>
    %150 = vector.broadcast %20 : f32 to vector<2x128xf32>
    %151 = arith.mulf %84, %150 : vector<2x128xf32>
    %152 = arith.addf %149, %151 : vector<2x128xf32>
    %153 = vector.broadcast %36 : f32 to vector<2x128xf32>
    %154 = arith.mulf %86, %153 : vector<2x128xf32>
    %155 = arith.addf %152, %154 : vector<2x128xf32>
    %156 = vector.broadcast %52 : f32 to vector<2x128xf32>
    %157 = arith.addf %155, %156 : vector<2x128xf32>
    %cst_129 = arith.constant 0.000000e+00 : f32
    %158 = vector.broadcast %cst_129 : f32 to vector<2x128xf32>
    %159 = arith.maximumf %157, %158 : vector<2x128xf32>
    %160 = vector.broadcast %68 : f32 to vector<2x128xf32>
    %161 = arith.mulf %159, %160 : vector<2x128xf32>
    %162 = arith.addf %147, %161 : vector<2x128xf32>
    %163 = vector.broadcast %5 : f32 to vector<2x128xf32>
    %164 = arith.mulf %82, %163 : vector<2x128xf32>
    %165 = vector.broadcast %21 : f32 to vector<2x128xf32>
    %166 = arith.mulf %84, %165 : vector<2x128xf32>
    %167 = arith.addf %164, %166 : vector<2x128xf32>
    %168 = vector.broadcast %37 : f32 to vector<2x128xf32>
    %169 = arith.mulf %86, %168 : vector<2x128xf32>
    %170 = arith.addf %167, %169 : vector<2x128xf32>
    %171 = vector.broadcast %53 : f32 to vector<2x128xf32>
    %172 = arith.addf %170, %171 : vector<2x128xf32>
    %cst_130 = arith.constant 0.000000e+00 : f32
    %173 = vector.broadcast %cst_130 : f32 to vector<2x128xf32>
    %174 = arith.maximumf %172, %173 : vector<2x128xf32>
    %175 = vector.broadcast %69 : f32 to vector<2x128xf32>
    %176 = arith.mulf %174, %175 : vector<2x128xf32>
    %177 = arith.addf %162, %176 : vector<2x128xf32>
    %178 = vector.broadcast %6 : f32 to vector<2x128xf32>
    %179 = arith.mulf %82, %178 : vector<2x128xf32>
    %180 = vector.broadcast %22 : f32 to vector<2x128xf32>
    %181 = arith.mulf %84, %180 : vector<2x128xf32>
    %182 = arith.addf %179, %181 : vector<2x128xf32>
    %183 = vector.broadcast %38 : f32 to vector<2x128xf32>
    %184 = arith.mulf %86, %183 : vector<2x128xf32>
    %185 = arith.addf %182, %184 : vector<2x128xf32>
    %186 = vector.broadcast %54 : f32 to vector<2x128xf32>
    %187 = arith.addf %185, %186 : vector<2x128xf32>
    %cst_131 = arith.constant 0.000000e+00 : f32
    %188 = vector.broadcast %cst_131 : f32 to vector<2x128xf32>
    %189 = arith.maximumf %187, %188 : vector<2x128xf32>
    %190 = vector.broadcast %70 : f32 to vector<2x128xf32>
    %191 = arith.mulf %189, %190 : vector<2x128xf32>
    %192 = arith.addf %177, %191 : vector<2x128xf32>
    %193 = vector.broadcast %7 : f32 to vector<2x128xf32>
    %194 = arith.mulf %82, %193 : vector<2x128xf32>
    %195 = vector.broadcast %23 : f32 to vector<2x128xf32>
    %196 = arith.mulf %84, %195 : vector<2x128xf32>
    %197 = arith.addf %194, %196 : vector<2x128xf32>
    %198 = vector.broadcast %39 : f32 to vector<2x128xf32>
    %199 = arith.mulf %86, %198 : vector<2x128xf32>
    %200 = arith.addf %197, %199 : vector<2x128xf32>
    %201 = vector.broadcast %55 : f32 to vector<2x128xf32>
    %202 = arith.addf %200, %201 : vector<2x128xf32>
    %cst_132 = arith.constant 0.000000e+00 : f32
    %203 = vector.broadcast %cst_132 : f32 to vector<2x128xf32>
    %204 = arith.maximumf %202, %203 : vector<2x128xf32>
    %205 = vector.broadcast %71 : f32 to vector<2x128xf32>
    %206 = arith.mulf %204, %205 : vector<2x128xf32>
    %207 = arith.addf %192, %206 : vector<2x128xf32>
    %208 = vector.broadcast %8 : f32 to vector<2x128xf32>
    %209 = arith.mulf %82, %208 : vector<2x128xf32>
    %210 = vector.broadcast %24 : f32 to vector<2x128xf32>
    %211 = arith.mulf %84, %210 : vector<2x128xf32>
    %212 = arith.addf %209, %211 : vector<2x128xf32>
    %213 = vector.broadcast %40 : f32 to vector<2x128xf32>
    %214 = arith.mulf %86, %213 : vector<2x128xf32>
    %215 = arith.addf %212, %214 : vector<2x128xf32>
    %216 = vector.broadcast %56 : f32 to vector<2x128xf32>
    %217 = arith.addf %215, %216 : vector<2x128xf32>
    %cst_133 = arith.constant 0.000000e+00 : f32
    %218 = vector.broadcast %cst_133 : f32 to vector<2x128xf32>
    %219 = arith.maximumf %217, %218 : vector<2x128xf32>
    %220 = vector.broadcast %72 : f32 to vector<2x128xf32>
    %221 = arith.mulf %219, %220 : vector<2x128xf32>
    %222 = arith.addf %207, %221 : vector<2x128xf32>
    %223 = vector.broadcast %9 : f32 to vector<2x128xf32>
    %224 = arith.mulf %82, %223 : vector<2x128xf32>
    %225 = vector.broadcast %25 : f32 to vector<2x128xf32>
    %226 = arith.mulf %84, %225 : vector<2x128xf32>
    %227 = arith.addf %224, %226 : vector<2x128xf32>
    %228 = vector.broadcast %41 : f32 to vector<2x128xf32>
    %229 = arith.mulf %86, %228 : vector<2x128xf32>
    %230 = arith.addf %227, %229 : vector<2x128xf32>
    %231 = vector.broadcast %57 : f32 to vector<2x128xf32>
    %232 = arith.addf %230, %231 : vector<2x128xf32>
    %cst_134 = arith.constant 0.000000e+00 : f32
    %233 = vector.broadcast %cst_134 : f32 to vector<2x128xf32>
    %234 = arith.maximumf %232, %233 : vector<2x128xf32>
    %235 = vector.broadcast %73 : f32 to vector<2x128xf32>
    %236 = arith.mulf %234, %235 : vector<2x128xf32>
    %237 = arith.addf %222, %236 : vector<2x128xf32>
    %238 = vector.broadcast %10 : f32 to vector<2x128xf32>
    %239 = arith.mulf %82, %238 : vector<2x128xf32>
    %240 = vector.broadcast %26 : f32 to vector<2x128xf32>
    %241 = arith.mulf %84, %240 : vector<2x128xf32>
    %242 = arith.addf %239, %241 : vector<2x128xf32>
    %243 = vector.broadcast %42 : f32 to vector<2x128xf32>
    %244 = arith.mulf %86, %243 : vector<2x128xf32>
    %245 = arith.addf %242, %244 : vector<2x128xf32>
    %246 = vector.broadcast %58 : f32 to vector<2x128xf32>
    %247 = arith.addf %245, %246 : vector<2x128xf32>
    %cst_135 = arith.constant 0.000000e+00 : f32
    %248 = vector.broadcast %cst_135 : f32 to vector<2x128xf32>
    %249 = arith.maximumf %247, %248 : vector<2x128xf32>
    %250 = vector.broadcast %74 : f32 to vector<2x128xf32>
    %251 = arith.mulf %249, %250 : vector<2x128xf32>
    %252 = arith.addf %237, %251 : vector<2x128xf32>
    %253 = vector.broadcast %11 : f32 to vector<2x128xf32>
    %254 = arith.mulf %82, %253 : vector<2x128xf32>
    %255 = vector.broadcast %27 : f32 to vector<2x128xf32>
    %256 = arith.mulf %84, %255 : vector<2x128xf32>
    %257 = arith.addf %254, %256 : vector<2x128xf32>
    %258 = vector.broadcast %43 : f32 to vector<2x128xf32>
    %259 = arith.mulf %86, %258 : vector<2x128xf32>
    %260 = arith.addf %257, %259 : vector<2x128xf32>
    %261 = vector.broadcast %59 : f32 to vector<2x128xf32>
    %262 = arith.addf %260, %261 : vector<2x128xf32>
    %cst_136 = arith.constant 0.000000e+00 : f32
    %263 = vector.broadcast %cst_136 : f32 to vector<2x128xf32>
    %264 = arith.maximumf %262, %263 : vector<2x128xf32>
    %265 = vector.broadcast %75 : f32 to vector<2x128xf32>
    %266 = arith.mulf %264, %265 : vector<2x128xf32>
    %267 = arith.addf %252, %266 : vector<2x128xf32>
    %268 = vector.broadcast %12 : f32 to vector<2x128xf32>
    %269 = arith.mulf %82, %268 : vector<2x128xf32>
    %270 = vector.broadcast %28 : f32 to vector<2x128xf32>
    %271 = arith.mulf %84, %270 : vector<2x128xf32>
    %272 = arith.addf %269, %271 : vector<2x128xf32>
    %273 = vector.broadcast %44 : f32 to vector<2x128xf32>
    %274 = arith.mulf %86, %273 : vector<2x128xf32>
    %275 = arith.addf %272, %274 : vector<2x128xf32>
    %276 = vector.broadcast %60 : f32 to vector<2x128xf32>
    %277 = arith.addf %275, %276 : vector<2x128xf32>
    %cst_137 = arith.constant 0.000000e+00 : f32
    %278 = vector.broadcast %cst_137 : f32 to vector<2x128xf32>
    %279 = arith.maximumf %277, %278 : vector<2x128xf32>
    %280 = vector.broadcast %76 : f32 to vector<2x128xf32>
    %281 = arith.mulf %279, %280 : vector<2x128xf32>
    %282 = arith.addf %267, %281 : vector<2x128xf32>
    %283 = vector.broadcast %13 : f32 to vector<2x128xf32>
    %284 = arith.mulf %82, %283 : vector<2x128xf32>
    %285 = vector.broadcast %29 : f32 to vector<2x128xf32>
    %286 = arith.mulf %84, %285 : vector<2x128xf32>
    %287 = arith.addf %284, %286 : vector<2x128xf32>
    %288 = vector.broadcast %45 : f32 to vector<2x128xf32>
    %289 = arith.mulf %86, %288 : vector<2x128xf32>
    %290 = arith.addf %287, %289 : vector<2x128xf32>
    %291 = vector.broadcast %61 : f32 to vector<2x128xf32>
    %292 = arith.addf %290, %291 : vector<2x128xf32>
    %cst_138 = arith.constant 0.000000e+00 : f32
    %293 = vector.broadcast %cst_138 : f32 to vector<2x128xf32>
    %294 = arith.maximumf %292, %293 : vector<2x128xf32>
    %295 = vector.broadcast %77 : f32 to vector<2x128xf32>
    %296 = arith.mulf %294, %295 : vector<2x128xf32>
    %297 = arith.addf %282, %296 : vector<2x128xf32>
    %298 = vector.broadcast %14 : f32 to vector<2x128xf32>
    %299 = arith.mulf %82, %298 : vector<2x128xf32>
    %300 = vector.broadcast %30 : f32 to vector<2x128xf32>
    %301 = arith.mulf %84, %300 : vector<2x128xf32>
    %302 = arith.addf %299, %301 : vector<2x128xf32>
    %303 = vector.broadcast %46 : f32 to vector<2x128xf32>
    %304 = arith.mulf %86, %303 : vector<2x128xf32>
    %305 = arith.addf %302, %304 : vector<2x128xf32>
    %306 = vector.broadcast %62 : f32 to vector<2x128xf32>
    %307 = arith.addf %305, %306 : vector<2x128xf32>
    %cst_139 = arith.constant 0.000000e+00 : f32
    %308 = vector.broadcast %cst_139 : f32 to vector<2x128xf32>
    %309 = arith.maximumf %307, %308 : vector<2x128xf32>
    %310 = vector.broadcast %78 : f32 to vector<2x128xf32>
    %311 = arith.mulf %309, %310 : vector<2x128xf32>
    %312 = arith.addf %297, %311 : vector<2x128xf32>
    %313 = vector.broadcast %15 : f32 to vector<2x128xf32>
    %314 = arith.mulf %82, %313 : vector<2x128xf32>
    %315 = vector.broadcast %31 : f32 to vector<2x128xf32>
    %316 = arith.mulf %84, %315 : vector<2x128xf32>
    %317 = arith.addf %314, %316 : vector<2x128xf32>
    %318 = vector.broadcast %47 : f32 to vector<2x128xf32>
    %319 = arith.mulf %86, %318 : vector<2x128xf32>
    %320 = arith.addf %317, %319 : vector<2x128xf32>
    %321 = vector.broadcast %63 : f32 to vector<2x128xf32>
    %322 = arith.addf %320, %321 : vector<2x128xf32>
    %cst_140 = arith.constant 0.000000e+00 : f32
    %323 = vector.broadcast %cst_140 : f32 to vector<2x128xf32>
    %324 = arith.maximumf %322, %323 : vector<2x128xf32>
    %325 = vector.broadcast %79 : f32 to vector<2x128xf32>
    %326 = arith.mulf %324, %325 : vector<2x128xf32>
    %327 = arith.addf %312, %326 : vector<2x128xf32>
    %328 = vector.broadcast %80 : f32 to vector<2x128xf32>
    %329 = arith.addf %327, %328 : vector<2x128xf32>
    %330 = math.tanh %329 : vector<2x128xf32>
    %c0_141 = arith.constant 0 : index
    %c0_142 = arith.constant 0 : index
    %c0_143 = arith.constant 0 : index
    %c0_144 = arith.constant 0 : index
    %331 = vector.load %arg7[%c0_141, %c0_142, %c0_143, %c0_144] : memref<1x1x2x128xf32, #tpu.memory_space<vmem>>, vector<1x1x2x128xf32>
    %332 = vector.shape_cast %331 : vector<1x1x2x128xf32> to vector<2x128xf32>
    %333 = vector.shape_cast %330 : vector<2x128xf32> to vector<1x1x2x128xf32>
    tpu.vector_store %arg7[%c0_141, %c0_142, %c0_143, %c0_144], %333 {strides = array<i32>} : memref<1x1x2x128xf32, #tpu.memory_space<vmem>>, vector<1x1x2x128xf32>,
    return
  }
  func.func @transform_0(%arg0: i32, %arg1: i32) -> (i32, i32, i32, i32) {
    %c0_i32 = arith.constant 0 : i32
    %c0_i32_0 = arith.constant 0 : i32
    %c0_i32_1 = arith.constant 0 : i32
    return %arg1, %c0_i32, %arg0, %c0_i32_0 : i32, i32, i32, i32
  }
  func.func @transform_1(%arg0: i32, %arg1: i32) -> (i32, i32) {
    %c0_i32 = arith.constant 0 : i32
    %c0_i32_0 = arith.constant 0 : i32
    %c0_i32_1 = arith.constant 0 : i32
    return %c0_i32, %c0_i32_0 : i32, i32
  }
  func.func @transform_2(%arg0: i32, %arg1: i32) -> i32 {
    %c0_i32 = arith.constant 0 : i32
    %c0_i32_0 = arith.constant 0 : i32
    return %c0_i32 : i32
  }
  func.func @transform_3(%arg0: i32, %arg1: i32) -> i32 {
    %c0_i32 = arith.constant 0 : i32
    %c0_i32_0 = arith.constant 0 : i32
    return %c0_i32 : i32
  }
  func.func @transform_4(%arg0: i32, %arg1: i32) -> i32 {
    %c0_i32 = arith.constant 0 : i32
    %c0_i32_0 = arith.constant 0 : i32
    return %c0_i32 : i32
  }
  func.func @transform_5(%arg0: i32, %arg1: i32) -> (i32, i32, i32, i32) {
    %c0_i32 = arith.constant 0 : i32
    %c0_i32_0 = arith.constant 0 : i32
    %c0_i32_1 = arith.constant 0 : i32
    return %arg1, %c0_i32, %arg0, %c0_i32_0 : i32, i32, i32, i32
  }
}

</mosaic_0001>

<bundles_post_ra>
// kernel: tpu_custom_call.1
= control target key start
LH: loop header
LB: loop body
LE: loop exit
PB: predicated region body
PF: predicated region fallthrough
CT: control target
= control target key end

     0   :  { %s1699_s0 = inlined_call_operand.hbm [shape: f32[2,3,2,128], index: 0, kind: input, shape index: {}]   ;;  %s1700_s1 = inlined_call_operand.vmem [shape: f32[3,16], index: 1, kind: input, shape index: {}]   ;;  %s1701_s2 = inlined_call_operand.vmem [shape: f32[16], index: 2, kind: input, shape index: {}]   ;;  %s1702_s3 = inlined_call_operand.vmem [shape: f32[16], index: 3, kind: input, shape index: {}]   ;;  %s1703_s4 = inlined_call_operand.<no memory space> [shape: f32[1], index: 4, kind: input, shape index: {}]   ;;  %s1704_s5 = inlined_call_operand.hbm [shape: f32[2,1,2,128], index: 5, kind: output, shape index: {}]  }
   0x1   :  { %1711 = sst [smem:[#allocation18_spill]] %s1699_s0 }
   0x2   :  { %1712 = sst [smem:[#allocation19_spill]] %s1700_s1 }
   0x3   :  { %1713 = sst [smem:[#allocation20_spill]] %s1701_s2 }
   0x4   :  { %1714 = sst [smem:[#allocation21_spill]] %s1702_s3 }
   0x5   :  { %10 = sst [smem:[#allocation2]] %s1703_s4 }
   0x6   :  { %11 = vsyncpa [#allocation4], 0 }
   0x7   :  { %13 = vsyncpa [#allocation4 + $0x1], 0 }
   0x8   :  { %14 = vsyncpa [#allocation6], 0 }
   0x9   :  { %15 = vsyncpa [#allocation9], 0 }
   0xa   :  { %16 = vsyncpa [#allocation5], 0 }
   0xb   :  { %18 = vsyncpa [#allocation5 + $0x1], 0  ;;  %s1144_s20 = smov 0   ;;  %s1146_s21 = smov 0  }
   0xc   :  { %s1148_s22 = smov 0   ;;  %s1150_s23 = smov 0  }
   0xd   :  { %s1152_s24 = smov 0   ;;  %s1154_s25 = smov 0  }
   0xe LB: > { %1715 = sst [smem:[#allocation16_spill]] %s1098_s24  ;;  %s741_s4 = sadd.s32 4294967295, %s1102_s25   ;;  %s1102_s25 = sphi %s1154_s25, %s24_s25   ;;  %s1098_s24 = sphi %s1152_s24, %s1736_s24   ;;  %s1094_s23 = sphi %s1150_s23, %s1735_s23   ;;  %s1090_s22 = sphi %s1148_s22, %s1739_s22   ;;  %s1086_s21 = sphi %s1146_s21, %s1738_s21   ;;  %s1082_s20 = sphi %s1144_s20, %s1737_s20  }
   0xf   : > { %s742_s26 = sadd.s32 4294967294, %s1102_s25   ;;  %p58_p0 = scmp.ne.s32.totalorder %s1086_s21, %s1082_s20 }
  0x10   : > { %p1178_p1 = scmp.eq.s32.totalorder %s741_s4, 0  ;;  %p1182_p2 = scmp.eq.s32.totalorder %s741_s4, 1 }
  0x11   : > { %p174_p3 = scmp.eq.s32.totalorder %s742_s26, 1  ;;  %p743_p5 = scmp.ge.s32.totalorder %s1102_s25, 1 }
  0x12   : > { %s1716_s27 = scalar_select %p1178_p1, 1, 0 }
  0x13   : > { %s1717_s28 = scalar_select %p1182_p2, 1, 0 }
  0x14   : > { %p1188_p4 = por %p1178_p1, %p58_p0  ;;  %p1193_p6 = por %p174_p3, %p58_p0 }
  0x15   : > { %p181_p7 = scmp.lt.s32.totalorder %s1102_s25, 3  ;;  %s1720_s2 = sld [smem:[#allocation20_spill]] }
  0x16   : > { %s1718_s29 = scalar_select %p1188_p4, 1, 0 }
  0x17   : > { %s1719_s30 = scalar_select %p1193_p6, 1, 0 }
  0x18   : > { %p1201_p8 = pnand %p743_p5, %p181_p7  ;;  %s1722_s1 = sld [smem:[#allocation19_spill]] }
  0x19   : > { %s1724_s3 = sld [smem:[#allocation21_spill]] }
  0x1a   : > { %s1721_s9 = scalar_select %p1201_p8, 1, 0 }
  0x1b   : > { %s205_s8 = sshll.u32 %s1720_s2, 4  ;;  %p856_p10 = pneg %p1201_p8  ;;  %s206_s8 = int_to_ptr.vmem [resolvable:$true] %s205_s8 }
  0x1c   : > { %s937_s17 = scalar_lea.vmem %s206_s8, 16  ;;  %p945_p5 = scmp.lt.s32.totalorder %s206_s8, %s206_s8 }
  0x1d   : > { %p1213_p11 = pnand %p856_p10, %p1178_p1  ;;  %p938_p12 = scmp.ne.s32.totalorder %s206_s8, %s937_s17 }
  0x1e   : > { %s194_s12 = sshll.u32 %s1722_s1, 4  ;;  %p946_p7 = scmp.lt.s32.totalorder %s937_s17, %s937_s17  ;;  %s195_s12 = int_to_ptr.vmem [resolvable:$true] %s194_s12 }
  0x1f   : > { %s216_s16 = sshll.u32 %s1724_s3, 4  ;;  %p939_p13 = pneg %p1213_p11  ;;  %s1220_s16 = int_to_ptr.vmem [resolvable:$true] %s216_s16 }
  0x20   : > { %p947_p10 = por %p946_p7, %p945_p5 }
  0x21   : > { %p940_p0 = pnand %p939_p13, %p938_p12 }
  0x23   : > { %p941_p3 = pneg %p940_p0 }
  0x25   : > { %p948_p9 = pnand %p947_p10, %p941_p3 }
  0x27   : > { %951 = shalt.err (!%p948_p9)
}
  0x28   : > { %s1104_s18 = smov [#allocation8]   ;;  %s952_s19 = scalar_lea.vmem %s195_s12, 64 }
  0x29   : > { %862 = dma.vmem_to_smem (!%p1213_p11), %s206_s8, 16, %s1104_s18, [#allocation9]  }
  0x2a   : > { %p953_p6 = scmp.ne.s32.totalorder %s195_s12, %s952_s19  ;;  %p960_p8 = scmp.lt.s32.totalorder %s195_s12, %s195_s12 }
  0x2b   : > { %p961_p2 = scmp.lt.s32.totalorder %s952_s19, %s952_s19 }
  0x2c   : > { %p955_p1 = pnand %p953_p6, %p939_p13 }
  0x2d   : > { %p962_p12 = por %p961_p2, %p960_p8 }
  0x2e   : > { %p956_p4 = pneg %p955_p1 }
  0x30   : > { %p963_p0 = pnand %p962_p12, %p956_p4 }
  0x32   : > { %966 = shalt.err (!%p963_p0)
}
  0x33   : > { %s1105_s4 = smov [#allocation7]   ;;  %s967_s26 = scalar_lea.vmem %s1220_s16, 16 }
  0x34   : > { %859 = dma.vmem_to_smem (!%p1213_p11), %s195_s12, 64, %s1105_s4, [#allocation6]  }
  0x35   : > { %p968_p9 = scmp.ne.s32.totalorder %s1220_s16, %s967_s26  ;;  %p975_p1 = scmp.lt.s32.totalorder %s1220_s16, %s1220_s16 }
  0x36   : > { %p976_p5 = scmp.lt.s32.totalorder %s967_s26, %s967_s26 }
  0x37   : > { %p970_p3 = pnand %p968_p9, %p939_p13 }
  0x38   : > { %p977_p2 = por %p976_p5, %p975_p1 }
  0x39   : > { %p971_p6 = pneg %p970_p3 }
  0x3b   : > { %p978_p4 = pnand %p977_p2, %p971_p6 }
  0x3d   : > { %981 = shalt.err (!%p978_p4)
}
  0x3e   : > { %s1106_s6 = smov [#allocation10]   ;;  %s45_s7 = sadd.s32 1, %s1090_s22 }
  0x3f   : > { %865 = dma.vmem_to_smem (!%p1213_p11), %s1220_s16, 16, %s1106_s6, [#allocation9]  }
  0x40   : > { %s33_s8 = sadd.s32 1, %s1098_s24  ;;  %p52_p8 = scmp.ne.s32.totalorder %s1090_s22, %s1086_s21 }
  0x41   : > { %p34_p13 = scmp.ge.s32.totalorder %s33_s8, 2  ;;  %p53_p7 = scmp.eq.s32.totalorder %s1102_s25, 0 }
  0x42   : > { %p1725_p10 = scmp.ne.s32.totalorder %s1717_s28, 0  ;;  %p877_p0 = scmp.lt.s32.totalorder %s1102_s25, 2 }
  0x43   : > { %s1741_s8 = smov (%p34_p13, %s33_s8), 0  ;;  %p54_p9 = por %p53_p7, %p52_p8 }
  0x44   : > { %p1251_p12 = por %p1725_p10, %p52_p8  ;;  %1727 = sst [smem:[#allocation17_spill]] %s1741_s8 }
  0x45   : > { %s230_s11 = sand.u32 1, %s1090_s22   ;;  %s40_s12 = ssub.s32 %s1098_s24, %s1741_s8 }
  0x46   : > { %p43_p3 = scmp.eq.s32.totalorder %s40_s12, 0  ;;  %s837_s13 = smul.u32 6, %s230_s11 }
  0x47   : > { %s838_s14 = smul.u32 96, %s1098_s24  ;;  %p1262_p11 = pnand %p877_p0, %p54_p9 }
  0x48   : > { %s1267_s28 = scalar_select %p43_p3, %s1090_s22, %s45_s7  }
  0x49   : > { %s1729_s0 = sld [smem:[#allocation18_spill]]  ;;  %s234_s19 = scalar_lea.vmem [#allocation3], %s837_s13 }
  0x4a   : > { %s242_s4 = sshll.u32 %s234_s19, 4  ;;  %s1276_s26 = scalar_lea.sflag [#allocation4], %s230_s11  ;;  %s1274_s4 = int_to_ptr.vmem [resolvable:$true] %s242_s4 }
  0x4b   : > { %p984_p1 = pneg %p1262_p11 }
  0x4f   : > { %s1272_s18 = scalar_lea.hbm %s1729_s0, %s838_s14  ;;  %s987_s14 = scalar_lea.hbm %s1729_s0, 192 }
  0x50   : > { %s982_s6 = scalar_lea.hbm %s1272_s18, 96  ;;  %p988_p4 = scmp.lt.u32.totalorder %s1272_s18, %s1729_s0 }
  0x51   : > { %p983_p6 = scmp.ne.s32.totalorder %s1272_s18, %s982_s6  ;;  %p989_p8 = scmp.lt.u32.totalorder %s987_s14, %s982_s6 }
  0x52   : > { %p991_p7 = scmp.lt.u32.totalorder %s982_s6, %s1272_s18 }
  0x53   : > { %p985_p5 = pnand %p984_p1, %p983_p6  ;;  %p990_p13 = por %p989_p8, %p988_p4 }
  0x55   : > { %p986_p2 = pneg %p985_p5  ;;  %p992_p10 = por %p991_p7, %p990_p13 }
  0x57   : > { %p993_p0 = pnand %p992_p10, %p986_p2 }
  0x59   : > { %996 = shalt.err (!%p993_p0)
}
  0x5a   : > { %s997_s11 = scalar_lea.vmem %s1274_s4, 96  ;;  %s1107_s13 = smov [#allocation3]  }
  0x5b   : > { %p998_p9 = scmp.ne.s32.totalorder %s1274_s4, %s997_s11  ;;  %s1002_s19 = sshll.u32 %s1107_s13, 4  ;;  %s1003_s19 = int_to_ptr.vmem [resolvable:$false] %s1002_s19 }
  0x5c   : > { %s1004_s7 = scalar_lea.vmem %s1003_s19, 192  ;;  %p1005_p5 = scmp.lt.s32.totalorder %s1274_s4, %s1003_s19 }
  0x5d   : > { %p1000_p3 = pnand %p998_p9, %p984_p1  ;;  %p1006_p4 = scmp.lt.s32.totalorder %s1004_s7, %s997_s11 }
  0x5f   : > { %p1001_p6 = pneg %p1000_p3  ;;  %p1007_p8 = por %p1006_p4, %p1005_p5 }
  0x61   : > { %p1008_p13 = pnand %p1007_p8, %p1001_p6 }
  0x63   : > { %1011 = shalt.err (!%p1008_p13)
}
  0x64   : > { %s1108_s6 = smov 32   ;;  %s1109_s12 = smov 2  }
  0x65   : > { %869 = dma.hbm_to_vmem [thread:$0]  (!%p1262_p11), %s1272_s18, 96, %s1274_s4, %s1276_s26, %s1108_s6, %s1108_s6, %s1109_s12  }
  0x66   : > { %p1730_p1 = scmp.ne.s32.totalorder %s1721_s9, 0 }
  0x67   : > { %s1307_s14 = sand.u32 (!%p1730_p1), 1, %s1086_s21   ;;  %p1731_p2 = scmp.ne.s32.totalorder (!%p1730_p1), %s1718_s29, 0 }
  0x68   : > { %254 = sbr.rel (%p1730_p1) target bundleno = 216 (0xd8), region = 40  ;;  %s257_s17 = scalar_lea.sflag (!%p1730_p1), [#allocation4], %s1307_s14 }
  0x69   : > { %s839_s16 = smul.u32 (!%p1730_p1), 6, %s1307_s14 }
  0x6b   : > { %s1311_s11 = scalar_lea.vmem (!%p1730_p1), [#allocation3], %s839_s16 }
  0x6f   : > { %1065 = dma.done.wait (%p1731_p2), %s257_s17, 96  }
  0x70   : > { %1067 = vsyncadd (%p1731_p2), %s257_s17, 4294967200  ;;  %p1732_p11 = scmp.ne.s32.totalorder %s1716_s27, 0 }
  0x72   : > { %1069 = dma.done.wait (%p1732_p11), [#allocation6], 64  }
  0x73   : > { %1071 = vsyncadd (%p1732_p11), [#allocation6], 4294967232 }
  0x74   : > { %1073 = dma.done.wait (%p1732_p11), [#allocation9], 32  }
  0x75   : > { %1075 = vsyncadd (%p1732_p11), [#allocation9], 4294967264 }
  0x76   : > { %277 = sfence }
  0x77   : > { %s300_s9 = sld [smem:[#allocation7]]  ;;  %s754_s15 = sld [smem:[#allocation7 + $0x1]]  ;;  %v1350_v0 = vld [vmem:[%s1311_s11] sm:$0x3]  ;;  %v1393_v19 = vld [vmem:[%s1311_s11 + $0x2] sm:$0x3] }
  0x78   : > { %s1325_s18 = sld [smem:[#allocation7 + $0x2]]  ;;  %s1327_s29 = sld [smem:[#allocation7 + $0x3]]  ;;  %v1461_v52 = vld [vmem:[%s1311_s11 + $0x4] sm:$0x3] }
  0x79   : > { %s1329_s4 = sld [smem:[#allocation7 + $0x4]]  ;;  %s1331_s26 = sld [smem:[#allocation7 + $0x5]] }
  0x7a   : > { %s1333_s13 = sld [smem:[#allocation7 + $0x6]]  ;;  %s1335_s19 = sld [smem:[#allocation7 + $0x7]] }
  0x7b   : > { %s1337_s27 = sld [smem:[#allocation7 + $0x8]]  ;;  %s1339_s7 = sld [smem:[#allocation7 + $0x9]] }
  0x7c   : > { %s1341_s6 = sld [smem:[#allocation7 + $0xa]]  ;;  %s1343_s12 = sld [smem:[#allocation7 + $0xb]] }
  0x7d   : > { %s1345_s16 = sld [smem:[#allocation7 + $0xc]]  ;;  %s1347_s17 = sld [smem:[#allocation7 + $0xd]]  ;;  %v386_v1 = vstv %s300_s9  ;;  %v400_v2 = vstv %s754_s15 }
  0x7e   : > { %s1352_s0 = sld [smem:[#allocation7 + $0xe]]  ;;  %s1354_s1 = sld [smem:[#allocation7 + $0xf]]  ;;  %v414_v3 = vstv %s1325_s18  ;;  %v428_v4 = vstv %s1327_s29  ;;  %v387_v7 = vmul.f32 %v386_v1, %v1350_v0  ;;  %v401_v8 = vmul.f32 %v400_v2, %v1350_v0 }
  0x7f   : > { %s1358_s2 = sld [smem:[#allocation7 + $0x80]]  ;;  %s1360_s3 = sld [smem:[#allocation7 + $0x81]]  ;;  %v442_v5 = vstv %s1329_s4  ;;  %v456_v6 = vstv %s1331_s26  ;;  %v415_v11 = vmul.f32 %v414_v3, %v1350_v0  ;;  %v429_v12 = vmul.f32 %v428_v4, %v1350_v0 }
  0x80   : > { %s1364_s8 = sld [smem:[#allocation7 + $0x82]]  ;;  %s1366_s24 = sld [smem:[#allocation7 + $0x83]]  ;;  %v470_v9 = vstv %s1333_s13  ;;  %v484_v10 = vstv %s1335_s19  ;;  %v443_v15 = vmul.f32 %v442_v5, %v1350_v0  ;;  %v457_v16 = vmul.f32 %v456_v6, %v1350_v0 }
  0x81   : > { %s1372_s9 = sld [smem:[#allocation7 + $0x84]]  ;;  %s1374_s15 = sld [smem:[#allocation7 + $0x85]]  ;;  %v498_v13 = vstv %s1337_s27  ;;  %v512_v14 = vstv %s1339_s7  ;;  %v471_v20 = vmul.f32 %v470_v9, %v1350_v0  ;;  %v485_v21 = vmul.f32 %v484_v10, %v1350_v0 }
  0x82   : > { %s1380_s18 = sld [smem:[#allocation7 + $0x86]]  ;;  %s1382_s29 = sld [smem:[#allocation7 + $0x87]]  ;;  %v526_v17 = vstv %s1341_s6  ;;  %v540_v18 = vstv %s1343_s12  ;;  %v1398_v22 = vmul.f32 %v498_v13, %v1350_v0  ;;  %v1406_v24 = vmul.f32 %v512_v14, %v1350_v0 }
  0x83   : > { %s1388_s4 = sld [smem:[#allocation7 + $0x88]]  ;;  %s1390_s26 = sld [smem:[#allocation7 + $0x89]]  ;;  %v554_v23 = vstv %s1345_s16  ;;  %v1409_v25 = vmul.f32 %v526_v17, %v1350_v0  ;;  %v1412_v26 = vmul.f32 %v540_v18, %v1350_v0  ;;  %v568_v27 = vstv %s1347_s17 }
  0x84   : > { %s1401_s13 = sld [smem:[#allocation7 + $0x8a]]  ;;  %s1403_s19 = sld [smem:[#allocation7 + $0x8b]]  ;;  %v1418_v30 = vmul.f32 %v554_v23, %v1350_v0  ;;  %v582_v31 = vstv %s1352_s0  ;;  %v1440_v42 = vmul.f32 %v568_v27, %v1350_v0  ;;  %v596_v43 = vstv %s1354_s1 }
  0x85   : > { %v388_v28 = vstv %s1358_s2  ;;  %v402_v29 = vstv %s1360_s3  ;;  %s1425_s27 = sld [smem:[#allocation7 + $0x100]]  ;;  %s1427_s7 = sld [smem:[#allocation7 + $0x101]]  ;;  %v1450_v47 = vmul.f32 %v582_v31, %v1350_v0 }
  0x86   : > { %v389_v32 = vmul.f32 %v1393_v19, %v388_v28  ;;  %v403_v33 = vmul.f32 %v1393_v19, %v402_v29  ;;  %v416_v34 = vstv %s1364_s8  ;;  %v430_v35 = vstv %s1366_s24  ;;  %s1433_s0 = sld [smem:[#allocation7 + $0x102]]  ;;  %s1435_s2 = sld [smem:[#allocation7 + $0x103]] }
  0x87   : > { %v417_v36 = vmul.f32 %v1393_v19, %v416_v34  ;;  %v431_v37 = vmul.f32 %v1393_v19, %v430_v35  ;;  %v444_v38 = vstv %s1372_s9  ;;  %v458_v39 = vstv %s1374_s15  ;;  %s1443_s3 = sld [smem:[#allocation7 + $0x104]]  ;;  %s1445_s24 = sld [smem:[#allocation7 + $0x105]] }
  0x88   : > { %v445_v40 = vmul.f32 %v1393_v19, %v444_v38  ;;  %v459_v41 = vmul.f32 %v1393_v19, %v458_v39  ;;  %v390_v44 = vadd.f32 %v389_v32, %v387_v7  ;;  %v472_v45 = vstv %s1380_s18  ;;  %s1452_s8 = sld [smem:[#allocation7 + $0x106]]  ;;  %s1454_s6 = sld [smem:[#allocation7 + $0x107]] }
  0x89   : > { %v486_v46 = vstv %s1382_s29  ;;  %v404_v48 = vadd.f32 %v403_v33, %v401_v8  ;;  %v418_v49 = vadd.f32 %v417_v36, %v415_v11  ;;  %v473_v50 = vmul.f32 %v1393_v19, %v472_v45  ;;  %s1458_s12 = sld [smem:[#allocation7 + $0x108]]  ;;  %s1464_s16 = sld [smem:[#allocation7 + $0x109]] }
  0x8a   : > { %v487_v51 = vmul.f32 %v1393_v19, %v486_v46  ;;  %v432_v53 = vadd.f32 %v431_v37, %v429_v12  ;;  %v446_v54 = vadd.f32 %v445_v40, %v443_v15  ;;  %v460_v55 = vadd.f32 %v459_v41, %v457_v16  ;;  %s1472_s11 = sld [smem:[#allocation7 + $0x10a]]  ;;  %s1478_s17 = sld [smem:[#allocation8]] }
  0x8b   : > { %v500_v56 = vstv %s1388_s4  ;;  %v474_v57 = vadd.f32 %v473_v50, %v471_v20  ;;  %v514_v58 = vstv %s1390_s26  ;;  %v528_v59 = vstv %s1401_s13  ;;  %s1480_s9 = sld [smem:[#allocation8 + $0x1]]  ;;  %s1486_s15 = sld [smem:[#allocation8 + $0x2]] }
  0x8c   : > { %v542_v60 = vstv %s1403_s19  ;;  %v391_v61 = vstv %s1425_s27  ;;  %v405_v62 = vstv %s1427_s7  ;;  %v488_v63 = vadd.f32 %v487_v51, %v485_v21  ;;  %s1488_s18 = sld [smem:[#allocation8 + $0x3]]  ;;  %s1494_s29 = sld [smem:[#allocation8 + $0x4]] }
  0x8d   : > { %v501_v1 = vmul.f32 %v1393_v19, %v500_v56  ;;  %v392_v2 = vmul.f32 %v1461_v52, %v391_v61  ;;  %v406_v3 = vmul.f32 %v1461_v52, %v405_v62  ;;  %v419_v4 = vstv %s1433_s0  ;;  %s1496_s4 = sld [smem:[#allocation8 + $0x5]]  ;;  %s1503_s26 = sld [smem:[#allocation8 + $0x6]] }
  0x8e   : > { %v433_v5 = vstv %s1435_s2  ;;  %v420_v6 = vmul.f32 %v1461_v52, %v419_v4  ;;  %v447_v8 = vstv %s1443_s3  ;;  %v461_v9 = vstv %s1445_s24  ;;  %s1505_s13 = sld [smem:[#allocation8 + $0x7]]  ;;  %s1509_s19 = sld [smem:[#allocation8 + $0x8]] }
  0x8f   : > { %v434_v7 = vmul.f32 %v1461_v52, %v433_v5  ;;  %v448_v10 = vmul.f32 %v1461_v52, %v447_v8  ;;  %v462_v11 = vmul.f32 %v1461_v52, %v461_v9  ;;  %v515_v12 = vmul.f32 %v1393_v19, %v514_v58  ;;  %s1512_s27 = sld [smem:[#allocation8 + $0x9]]  ;;  %s1520_s7 = sld [smem:[#allocation8 + $0xa]] }
  0x90   : > { %v529_v13 = vmul.f32 %v1393_v19, %v528_v59  ;;  %v393_v14 = vadd.f32 %v392_v2, %v390_v44  ;;  %v475_v15 = vstv %s1452_s8  ;;  %v489_v16 = vstv %s1454_s6  ;;  %s1524_s0 = sld [smem:[#allocation10]]  ;;  %s1526_s2 = sld [smem:[#allocation10 + $0x1]] }
  0x91   : > { %v1501_v17 = vmul.f32 %v1393_v19, %v542_v60  ;;  %v407_v18 = vadd.f32 %v406_v3, %v404_v48  ;;  %v421_v20 = vadd.f32 %v420_v6, %v418_v49  ;;  %v476_v21 = vmul.f32 %v1461_v52, %v475_v15  ;;  %s1530_s3 = sld [smem:[#allocation10 + $0x2]]  ;;  %s1532_s24 = sld [smem:[#allocation10 + $0x3]] }
  0x92   : > { %v490_v23 = vmul.f32 %v1461_v52, %v489_v16  ;;  %v435_v27 = vadd.f32 %v434_v7, %v432_v53  ;;  %v449_v28 = vadd.f32 %v448_v10, %v446_v54  ;;  %v463_v29 = vadd.f32 %v462_v11, %v460_v55  ;;  %s1536_s8 = sld [smem:[#allocation10 + $0x4]]  ;;  %s1538_s6 = sld [smem:[#allocation10 + $0x5]] }
  0x93   : > { %v503_v31 = vstv %s1458_s12  ;;  %v477_v32 = vadd.f32 %v476_v21, %v474_v57  ;;  %v502_v33 = vadd.f32 %v501_v1, %v1398_v22  ;;  %v516_v34 = vadd.f32 %v515_v12, %v1406_v24  ;;  %s1543_s12 = sld [smem:[#allocation10 + $0x6]]  ;;  %s1595_s1 = sld [smem:[#allocation10 + $0xb]] }
  0x94   : > { %v517_v35 = vstv %s1464_s16  ;;  %v394_v36 = vstv %s1478_s17  ;;  %v408_v37 = vstv %s1480_s9  ;;  %v491_v38 = vadd.f32 %v490_v23, %v488_v63  ;;  %s1545_s16 = sld [smem:[#allocation10 + $0x7]]  ;;  %s1547_s17 = sld [smem:[#allocation10 + $0x8]] }
  0x95   : > { %v504_v39 = vmul.f32 %v1461_v52, %v503_v31  ;;  %v395_v40 = vadd.f32 %v394_v36, %v393_v14  ;;  %v409_v41 = vadd.f32 %v408_v37, %v407_v18  ;;  %v422_v44 = vstv %s1486_s15  ;;  %s1550_s9 = sld [smem:[#allocation7 + $0x10b]]  ;;  %s1555_s15 = sld [smem:[#allocation7 + $0x8c]] }
  0x96   : > { %v436_v45 = vstv %s1488_s18  ;;  %v423_v22 = vadd.f32 %v422_v44, %v421_v20  ;;  %v450_v46 = vstv %s1494_s29  ;;  %v464_v48 = vstv %s1496_s4  ;;  %s1559_s18 = sld [smem:[#allocation7 + $0x10c]]  ;;  %s1561_s29 = sld [smem:[#allocation8 + $0xb]] }
  0x97   : > { %v437_v24 = vadd.f32 %v436_v45, %v435_v27  ;;  %v451_v49 = vadd.f32 %v450_v46, %v449_v28  ;;  %v465_v50 = vadd.f32 %v464_v48, %v463_v29  ;;  %v518_v51 = vmul.f32 %v1461_v52, %v517_v35  ;;  %s1565_s4 = sld [smem:[#allocation8 + $0xc]] }
  0x98   : > { %v530_v53 = vadd.f32 %v529_v13, %v1409_v25  ;;  %v396_v54 = vmax.f32 %v395_v40, 0.0  ;;  %v478_v55 = vstv %s1503_s26  ;;  %v492_v56 = vstv %s1505_s13  ;;  %s1567_s26 = sld [smem:[#allocation10 + $0xa]]  ;;  %s1572_s13 = sld [smem:[#allocation7 + $0x8d]] }
  0x99   : > { %v531_v57 = vstv %s1472_s11  ;;  %v410_v58 = vmax.f32 %v409_v41, 0.0  ;;  %v424_v59 = vmax.f32 %v423_v22, 0.0  ;;  %v479_v60 = vadd.f32 %v478_v55, %v477_v32  ;;  %s1552_s11 = sld [smem:[#allocation10 + $0x9]] }
  0x9a   : > { %v493_v25 = vadd.f32 %v492_v56, %v491_v38  ;;  %v438_v61 = vmax.f32 %v437_v24, 0.0  ;;  %v452_v62 = vmax.f32 %v451_v49, 0.0  ;;  %v505_v63 = vadd.f32 %v504_v39, %v502_v33 }
  0x9b   : > { %v506_v1 = vstv %s1509_s19  ;;  %v466_v2 = vmax.f32 %v465_v50, 0.0  ;;  %v480_v3 = vmax.f32 %v479_v60, 0.0  ;;  %v519_v4 = vadd.f32 %v518_v51, %v516_v34  ;;  %s1574_s19 = sld [smem:[#allocation7 + $0x10d]] }
  0x9c   : > { %v520_v5 = vstv %s1512_s27  ;;  %v397_v6 = vstv %s1524_s0  ;;  %v411_v7 = vstv %s1526_s2  ;;  %v494_v8 = vmax.f32 %v493_v25, 0.0  ;;  %s1584_s27 = sld [smem:[#allocation8 + $0xd]]  ;;  %s1587_s0 = sld [smem:[#allocation7 + $0x8e]] }
  0x9d   : > { %v507_v9 = vadd.f32 %v506_v1, %v505_v63  ;;  %v398_v10 = vmul.f32 %v397_v6, %v396_v54  ;;  %v412_v11 = vmul.f32 %v411_v7, %v410_v58  ;;  %v425_v12 = vstv %s1530_s3  ;;  %s1589_s2 = sld [smem:[#allocation7 + $0x10e]]  ;;  %s1601_s3 = sld [smem:[#allocation7 + $0x8f]] }
  0x9e   : > { %v439_v13 = vstv %s1532_s24  ;;  %v426_v14 = vmul.f32 %v425_v12, %v424_v59  ;;  %v453_v15 = vstv %s1536_s8  ;;  %v467_v16 = vstv %s1538_s6  ;;  %s1606_s24 = sld [smem:[#allocation7 + $0x10f]]  ;;  %s1608_s8 = sld [smem:[#allocation8 + $0xe]] }
  0x9f   : > { %v532_v18 = vmul.f32 %v1461_v52, %v531_v57  ;;  %v413_v20 = vadd.f32 %v412_v11, %v398_v10  ;;  %v440_v21 = vmul.f32 %v439_v13, %v438_v61  ;;  %v481_v23 = vstv %s1543_s12  ;;  %s1616_s6 = sld [smem:[#allocation10 + $0xd]]  ;;  %s1620_s12 = sld [smem:[#allocation8 + $0xf]] }
  0xa0   : > { %v521_v27 = vadd.f32 %v520_v5, %v519_v4  ;;  %v495_v28 = vstv %s1545_s16  ;;  %v508_v29 = vmax.f32 %v507_v9, 0.0  ;;  %v534_v31 = vstv %s1520_s7  ;;  %s1597_s7 = sld [smem:[#allocation10 + $0xc]]  ;;  %s1623_s16 = sld [smem:[#allocation10 + $0xe]] }
  0xa1   : > { %v1582_v32 = vmul.f32 %v596_v43, %v1350_v0  ;;  %v427_v33 = vadd.f32 %v426_v14, %v413_v20  ;;  %v454_v34 = vmul.f32 %v453_v15, %v452_v62  ;;  %v468_v35 = vmul.f32 %v467_v16, %v466_v2 }
  0xa2   : > { %v509_v36 = vstv %s1547_s17  ;;  %v482_v37 = vmul.f32 %v481_v23, %v480_v3  ;;  %v496_v38 = vmul.f32 %v495_v28, %v494_v8  ;;  %v533_v39 = vadd.f32 %v532_v18, %v530_v53  ;;  %s1632_s17 = sld [smem:[#allocation10 + $0xf]] }
  0xa3   : > { %v544_v0 = vadd.f32 %v1501_v17, %v1412_v26  ;;  %v441_v43 = vadd.f32 %v440_v21, %v427_v33  ;;  %v522_v40 = vmax.f32 %v521_v27, 0.0  ;;  %v523_v41 = vstv %s1552_s11  ;;  %s753_s11 = sshll.u32 %s1307_s14, 1 }
  0xa4   : > { %v545_v44 = vstv %s1550_s9  ;;  %v510_v45 = vmul.f32 %v509_v36, %v508_v29  ;;  %v535_v22 = vadd.f32 %v534_v31, %v533_v39  ;;  %v556_v46 = vstv %s1555_s15  ;;  %s380_s9 = sld [smem:[#allocation2]]  ;;  %s834_s15 = sshll.u32 %s1094_s23, 5 }
  0xa5   : > { %v546_v24 = vmul.f32 %v1461_v52, %v545_v44  ;;  %v455_v26 = vadd.f32 %v454_v34, %v441_v43  ;;  %v548_v17 = vstv %s1561_s29  ;;  %v557_v48 = vmul.f32 %v1393_v19, %v556_v46  ;;  %s1110_s23 = smov [#allocation11]  }
  0xa6   : > { %v559_v49 = vstv %s1559_s18  ;;  %v537_v50 = vstv %s1567_s26  ;;  %v562_v54 = vstv %s1565_s4  ;;  %v570_v57 = vstv %s1572_s13  ;;  %s299_s18 = scalar_lea.vmem [#allocation11], %s753_s11  ;;  %s1650_s13 = scalar_lea.hbm %s1704_s5, %s834_s15 }
  0xa7   : > { %v547_v51 = vadd.f32 %v546_v24, %v544_v0  ;;  %v560_v53 = vmul.f32 %v1461_v52, %v559_v49  ;;  %v469_v55 = vadd.f32 %v468_v35, %v455_v26  ;;  %v558_v56 = vadd.f32 %v557_v48, %v1418_v30  ;;  %s629_s29 = sshll.u32 %s299_s18, 4  ;;  %s1652_s29 = int_to_ptr.vmem [resolvable:$true] %s629_s29 }
  0xa8   : > { %v573_v58 = vstv %s1574_s19  ;;  %v536_v59 = vmax.f32 %v535_v22, 0.0  ;;  %v571_v25 = vmul.f32 %v1393_v19, %v570_v57  ;;  %v524_v63 = vmul.f32 %v523_v41, %v522_v40  ;;  %s615_s19 = scalar_lea.sflag [#allocation5], %s1307_s14 }
  0xa9   : > { %v549_v60 = vadd.f32 %v548_v17, %v547_v51  ;;  %v574_v61 = vmul.f32 %v1461_v52, %v573_v58  ;;  %v483_v62 = vadd.f32 %v482_v37, %v469_v55  ;;  %v561_v1 = vadd.f32 %v560_v53, %v558_v56 }
  0xaa   : > { %v576_v30 = vstv %s1584_s27  ;;  %v572_v3 = vadd.f32 %v571_v25, %v1440_v42  ;;  %v584_v4 = vstv %s1587_s0  ;;  %v587_v5 = vstv %s1589_s2  ;;  %s1012_s27 = scalar_lea.vmem %s1652_s29, 32  ;;  %s1016_s0 = sshll.u32 %s1110_s23, 4  ;;  %s1017_s0 = int_to_ptr.vmem [resolvable:$false] %s1016_s0 }
  0xab   : > { %v550_v2 = vmax.f32 %v549_v60, 0.0  ;;  %v497_v6 = vadd.f32 %v496_v38, %v483_v62  ;;  %v563_v7 = vadd.f32 %v562_v54, %v561_v1  ;;  %v585_v8 = vmul.f32 %v1393_v19, %v584_v4  ;;  %p1013_p7 = scmp.ne.s32.totalorder %s1652_s29, %s1012_s27  ;;  %s1018_s2 = scalar_lea.vmem %s1017_s0, 64 }
  0xac   : > { %v588_v9 = vmul.f32 %v1461_v52, %v587_v5  ;;  %v538_v10 = vmul.f32 %v537_v50, %v536_v59  ;;  %v551_v11 = vstv %s1595_s1  ;;  %v565_v12 = vstv %s1597_s7  ;;  %p1019_p9 = scmp.lt.s32.totalorder %s1652_s29, %s1017_s0  ;;  %p1020_p3 = scmp.lt.s32.totalorder %s1018_s2, %s1012_s27 }
  0xad   : > { %v575_v13 = vadd.f32 %v574_v61, %v572_v3  ;;  %v511_v14 = vadd.f32 %v510_v45, %v497_v6  ;;  %v564_v15 = vmax.f32 %v563_v7, 0.0  ;;  %v586_v42 = vadd.f32 %v585_v8, %v1450_v47  ;;  %p1014_p10 = pnand %p1013_p7, %p1251_p12 }
  0xae   : > { %v598_v16 = vstv %s1601_s3  ;;  %v590_v20 = vstv %s1608_s8  ;;  %v601_v23 = vstv %s1606_s24  ;;  %v552_v28 = vmul.f32 %v551_v11, %v550_v2  ;;  %p1021_p6 = por %p1020_p3, %p1019_p9 }
  0xaf   : > { %v577_v18 = vadd.f32 %v576_v30, %v575_v13  ;;  %v599_v21 = vmul.f32 %v1393_v19, %v598_v16  ;;  %v525_v27 = vadd.f32 %v524_v63, %v511_v14  ;;  %v589_v29 = vadd.f32 %v588_v9, %v586_v42  ;;  %p1015_p0 = pneg %p1014_p10 }
  0xb0   : > { %v602_v31 = vmul.f32 %v1461_v52, %v601_v23  ;;  %v579_v34 = vstv %s1616_s6  ;;  %v566_v47 = vmul.f32 %v565_v12, %v564_v15  ;;  %v604_v38 = vstv %s1620_s12 }
  0xb1   : > { %v578_v33 = vmax.f32 %v577_v18, 0.0  ;;  %v600_v35 = vadd.f32 %v599_v21, %v1582_v32  ;;  %v539_v36 = vadd.f32 %v538_v10, %v525_v27  ;;  %v591_v37 = vadd.f32 %v590_v20, %v589_v29  ;;  %p1022_p5 = pnand %p1021_p6, %p1015_p0 }
  0xb2   : > { %v593_v39 = vstv %s1623_s16  ;;  %v607_v45 = vstv %s1632_s17  ;;  %v610_v26 = vstv %s380_s9 }
  0xb3   : > { %v603_v0 = vadd.f32 %v602_v31, %v600_v35  ;;  %v553_v19 = vadd.f32 %v552_v28, %v539_v36  ;;  %v580_v43 = vmul.f32 %v579_v34, %v578_v33  ;;  %v592_v40 = vmax.f32 %v591_v37, 0.0 }
  0xb5   : > { %v605_v41 = vadd.f32 %v604_v38, %v603_v0  ;;  %v567_v44 = vadd.f32 %v566_v47, %v553_v19  ;;  %v594_v52 = vmul.f32 %v593_v39, %v592_v40 }
  0xb7   : > { %v606_v22 = vmax.f32 %v605_v41, 0.0  ;;  %v581_v24 = vadd.f32 %v580_v43, %v567_v44 }
  0xb9   : > { %v608_v32 = vmul.f32 %v607_v45, %v606_v22  ;;  %v595_v46 = vadd.f32 %v594_v52, %v581_v24 }
  0xbb   : > { %v609_v17 = vadd.f32 %v608_v32, %v595_v46 }
  0xbd   : > { %v611_v48 = vadd.f32 %v610_v26, %v609_v17 }
  0xbf   : > { %935 = vtanh.f32 %v611_v48 }
  0xc9   : > { %v936_v49 = vpop.eup %935 }
  0xca   : > { %613 = vst [vmem:[%s299_s18] sm:$0x3] %v936_v49 }
  0xcb   : > { %1025 = shalt.err (!%p1022_p5)
}
  0xcc   : > { %s1026_s14 = scalar_lea.hbm %s1650_s13, 32  ;;  %s1030_s3 = scalar_lea.hbm %s1704_s5, 64 }
  0xcd   : > { %p1027_p4 = scmp.ne.s32.totalorder %s1650_s13, %s1026_s14  ;;  %p1031_p1 = scmp.lt.u32.totalorder %s1650_s13, %s1704_s5 }
  0xce   : > { %p1032_p2 = scmp.lt.u32.totalorder %s1030_s3, %s1026_s14  ;;  %p1034_p7 = scmp.lt.u32.totalorder %s1026_s14, %s1650_s13 }
  0xcf   : > { %p1028_p8 = pnand %p1027_p4, %p1251_p12 }
  0xd0   : > { %p1033_p11 = por %p1032_p2, %p1031_p1 }
  0xd1   : > { %p1029_p13 = pneg %p1028_p8 }
  0xd2   : > { %p1035_p10 = por %p1034_p7, %p1033_p11 }
  0xd4   : > { %p1036_p0 = pnand %p1035_p10, %p1029_p13 }
  0xd6   : > { %1039 = shalt.err (!%p1036_p0)
}
  0xd7   : > { %854 = dma.vmem_to_hbm [thread:$0]  (%p1251_p12), %s1652_s29, 32, %s1650_s13, %s615_s19  }
  0xd8 PF: > { %s641_s6 = sand.u32 1, %s1082_s20   ;;  %p1733_p9 = scmp.ne.s32.totalorder %s1719_s30, 0 }
  0xd9   : > { %p1734_p3 = scmp.ge.s32.totalorder %s1102_s25, 2  ;;  %s642_s12 = scalar_lea.sflag [#allocation5], %s641_s6 }
  0xdb   : > { %p871_p6 = pnand %p1734_p3, %p1733_p9 }
  0xdd   : > { %1077 = dma.done.wait (!%p871_p6), %s642_s12, 32  }
  0xde   : > { %1079 = vsyncadd (!%p871_p6), %s642_s12, 4294967264  ;;  %s24_s25 = sadd.s32 1, %s1102_s25   ;;  %s1735_s23 = sld [smem:[#allocation16_spill]] }
  0xdf   : > { %p21_p5 = scmp.ge.s32.totalorder %s24_s25, 4   ;;  %s1736_s24 = sld [smem:[#allocation17_spill]] }
  0xe0   : > { %s1737_s20 = smov %s1086_s21  ;;  %s1738_s21 = smov %s1090_s22 }
  0xe1   : > { %s1739_s22 = smov %s1267_s28  ;;  %23 = sbr.rel (!%p21_p5) target bundleno = 14 (0xe), region = 100 }
  0xe8   :  { %647 = vsyncpa [#allocation4], 1 }
  0xe9   :  { %649 = vsyncpa [#allocation4 + $0x1], 1 }
  0xea   :  { %650 = vsyncpa [#allocation5], 1 }
  0xeb   :  { %652 = vsyncpa [#allocation5 + $0x1], 1 }
  0xec   :  { %653 = vsyncpa [#allocation6], 1 }
  0xed   :  { %655 = vsyncpa [#allocation6 + $0x1], 1 }
  0xee   :  { %656 = vsyncpa [#allocation9], 1 }

</bundles_post_ra>
